<compile_context>
chip_gen: v7x
topology: tpu7x:2x2x1
jax: 0.10.0
libtpu: 0.0.40
codegen_flags: <defaults>
</compile_context>

<pallas_src>
import math
import functools

import jax
import jax.numpy as jnp
from jax.experimental import pallas as pl
from jax.experimental.pallas import tpu as pltpu

LEAKY_SLOPE = 0.01  # torch.nn.LeakyReLU default negative_slope
LANE = 128          # vreg lane width / MXU tile edge
SUBLANE = 8         # vreg sublane count (f32)


def _leaky_relu(x):
    return jnp.where(x > 0, x, LEAKY_SLOPE * x)


def _round_up(n, m):
    return ((n + m - 1) // m) * m


# ---------------------------------------------------------------------------
# Kernel body: one batch tile per grid step; weights/biases are the same
# resident VMEM block every step.  All three matmuls accumulate in f32 on the
# MXU; bias-add + LeakyReLU run on the VPU; output store is lane-dense.
# ---------------------------------------------------------------------------
def fc_model_kernel(x_ref, w1_ref, b1_ref, w2_ref, b2_ref, w3_ref, b3_ref, o_ref):
    x = x_ref[...].astype(jnp.float32)

    h1 = jnp.dot(x, w1_ref[...], preferred_element_type=jnp.float32) + b1_ref[...]
    h1 = _leaky_relu(h1)

    h2 = jnp.dot(h1, w2_ref[...], preferred_element_type=jnp.float32) + b2_ref[...]
    h2 = _leaky_relu(h2)

    h3 = jnp.dot(h2, w3_ref[...], preferred_element_type=jnp.float32) + b3_ref[...]
    h3 = _leaky_relu(h3)  # PyTorch fc_model applies the activation on fc3 too.

    o_ref[...] = h3.astype(o_ref.dtype)


# ---------------------------------------------------------------------------
# Generation-aware configuration.
# ---------------------------------------------------------------------------
def _device_config():
    """VMEM limit + max batch tile by TPU generation."""
    vmem_cap = 64 * 1024 * 1024  # conservative fallback (treat as v7x-class)
    try:
        vmem_cap = int(pltpu.get_tpu_info().vmem_capacity_bytes)
    except Exception:
        pass
    if vmem_cap >= 100 * 1024 * 1024:
        # v5e / v6e: 128 MiB physical VMEM -> big tiles, high scoped limit.
        return {"vmem_limit": 96 * 1024 * 1024, "max_tb": 512}
    # v7x: 64 MiB per TensorCore -> cap the scoped limit and budget explicitly.
    return {"vmem_limit": 48 * 1024 * 1024, "max_tb": 256}


def _pick_batch_tile(batch, in_f, hid, hid2, op, vmem_limit, max_tb):
    """Largest multiple-of-8 batch tile whose footprint fits the VMEM budget:
    double-buffered x/out + single-buffered weights + activation temporaries."""
    weight_bytes = 4 * (in_f * hid + hid + hid * hid2 + hid2 + hid2 * op + op)
    tb = min(max_tb, _round_up(max(batch, 1), SUBLANE))
    tb = _round_up(tb, SUBLANE)
    while tb > SUBLANE:
        tile_bytes = 4 * (2 * (tb * in_f + tb * op) + tb * (hid + hid2 + op))
        if weight_bytes + tile_bytes <= int(0.8 * vmem_limit):
            break
        tb = _round_up(tb // 2, SUBLANE)
    return max(tb, SUBLANE)


# ---------------------------------------------------------------------------
# One-time parameter preparation (perf feedback: do NOT re-pad weights per call).
# Only the final output feature dim is padded up to a lane multiple so the
# kernel's output stores are dense (no masked vst).
# ---------------------------------------------------------------------------
def prepare_params(w1, b1, w2, b2, w3, b3):
    out_f = w3.shape[1]
    op = _round_up(out_f, LANE)
    w3p = jnp.pad(w3, ((0, 0), (0, op - out_f)))
    b3p = jnp.pad(b3, ((0, 0), (0, op - out_f)))
    return (w1, b1, w2, b2, w3p, b3p), out_f


# ---------------------------------------------------------------------------
# Jitted forward (static tile / vmem / buffering choices).
# ---------------------------------------------------------------------------
@functools.partial(jax.jit,
                   static_argnames=("tb", "vmem_limit", "single_buffer_weights"))
def _fc_forward(x, w1, b1, w2, b2, w3p, b3p, *, tb, vmem_limit,
                single_buffer_weights):
    batch, in_f = x.shape
    hid = w1.shape[1]
    hid2 = w2.shape[1]
    op = w3p.shape[1]

    # Only the batch dim is padded per call (to a multiple of the tile size).
    bp = _round_up(max(batch, 1), tb)
    xp = jnp.pad(x, ((0, bp - batch), (0, 0)))

    grid = (bp // tb,)

    if single_buffer_weights:
        # Constant-index blocks never change -> one VMEM buffer is enough.
        def wspec(shape):
            return pl.BlockSpec(shape, lambda i: (0, 0),
                                pipeline_mode=pl.Buffered(1))
    else:
        def wspec(shape):
            return pl.BlockSpec(shape, lambda i: (0, 0))

    flops = 2 * bp * (in_f * hid + hid * hid2 + hid2 * op)
    bytes_accessed = 4 * (bp * in_f + bp * op
                          + in_f * hid + hid + hid * hid2 + hid2
                          + hid2 * op + op)

    out_padded = pl.pallas_call(
        fc_model_kernel,
        out_shape=jax.ShapeDtypeStruct((bp, op), x.dtype),
        grid=grid,
        in_specs=[
            # x: one (tb, in_f) tile per step; feature dim left at full extent
            # (no lane inflation in HBM).
            pl.BlockSpec((tb, in_f), lambda i: (i, 0)),
            # Weights / biases: resident in VMEM across the whole grid.
            wspec((in_f, hid)),
            wspec((1, hid)),
            wspec((hid, hid2)),
            wspec((1, hid2)),
            wspec((hid2, op)),
            wspec((1, op)),
        ],
        # Output stays lane-dense (op is a multiple of 128).
        out_specs=pl.BlockSpec((tb, op), lambda i: (i, 0)),
        compiler_params=pltpu.CompilerParams(
            # Batch tiles are independent -> megacore-shardable on v7x.
            dimension_semantics=("parallel",),
            vmem_limit_bytes=vmem_limit,
        ),
        cost_estimate=pl.CostEstimate(
            flops=flops, transcendentals=0, bytes_accessed=bytes_accessed),
    )(xp, w1, b1, w2, b2, w3p, b3p)

    return out_padded[:batch, :]


def fc_model_forward(x, padded_params, out_f, *, block_batch=None):
    """Forward pass. `padded_params` comes from prepare_params (done once)."""
    cfg = _device_config()
    w1, b1, w2, b2, w3p, b3p = padded_params
    in_f = x.shape[1]
    hid, hid2, op = w1.shape[1], w2.shape[1], w3p.shape[1]
    max_tb = block_batch if block_batch is not None else cfg["max_tb"]
    tb = _pick_batch_tile(x.shape[0], in_f, hid, hid2, op,
                          cfg["vmem_limit"], max_tb)

    try:
        out = _fc_forward(x, w1, b1, w2, b2, w3p, b3p,
                          tb=tb, vmem_limit=cfg["vmem_limit"],
                          single_buffer_weights=True)
        out = jax.block_until_ready(out)
    except Exception:
        # Fallback if this jax/libtpu build rejects pipeline_mode=Buffered(1):
        # default (double) buffering of the resident weight blocks.
        out = _fc_forward(x, w1, b1, w2, b2, w3p, b3p,
                          tb=tb, vmem_limit=cfg["vmem_limit"],
                          single_buffer_weights=False)
        out = jax.block_until_ready(out)

    return out[:, :out_f]


# ---------------------------------------------------------------------------
# Parameter init (matches reset_parameters) + pure-JAX reference.
# ---------------------------------------------------------------------------
def init_params(key, input_size, hidden_size, output_size):
    """uniform(-std, std) with std = 1/sqrt(hidden_size), as in reset_parameters."""
    std = 1.0 / math.sqrt(hidden_size)
    hidden2 = int(hidden_size / 2)
    ks = jax.random.split(key, 6)
    u = lambda k, shape: jax.random.uniform(k, shape, jnp.float32, -std, std)
    # Weights stored [in, out] (transposed vs. PyTorch's [out, in]) so y = x @ W + b.
    w1 = u(ks[0], (input_size, hidden_size))
    b1 = u(ks[1], (1, hidden_size))
    w2 = u(ks[2], (hidden_size, hidden2))
    b2 = u(ks[3], (1, hidden2))
    w3 = u(ks[4], (hidden2, output_size))
    b3 = u(ks[5], (1, output_size))
    return w1, b1, w2, b2, w3, b3


def reference_forward(x, w1, b1, w2, b2, w3, b3):
    h = _leaky_relu(x @ w1 + b1)
    h = _leaky_relu(h @ w2 + b2)
    h = _leaky_relu(h @ w3 + b3)
    return h


if __name__ == "__main__":
    # Small shapes consistent with the module.
    batch, input_size, hidden_size, output_size = 8, 16, 32, 8

    key = jax.random.PRNGKey(0)
    kx, kp = jax.random.split(key)
    x = jax.random.normal(kx, (batch, input_size), jnp.float32)
    raw_params = init_params(kp, input_size, hidden_size, output_size)

    # One-time padding of the output-layer params (outside the forward path).
    padded_params, out_f = prepare_params(*raw_params)

    out = fc_model_forward(x, padded_params, out_f)
    out = jax.block_until_ready(out)

    ref = reference_forward(x, *raw_params)
    assert out.shape == (batch, output_size)
    assert jnp.allclose(out, ref, atol=1e-5, rtol=1e-5), "mismatch vs JAX reference"

    print("KERNEL_OK")
</pallas_src>

<mosaic_0001>
module attributes {stable_mosaic.version = 11 : i64} {
  func.func @fc_model_kernel(%arg0: i32, %arg1: memref<8x16xf32, #tpu.memory_space<vmem>>, %arg2: memref<16x32xf32, #tpu.memory_space<vmem>>, %arg3: memref<1x32xf32, #tpu.memory_space<vmem>>, %arg4: memref<32x16xf32, #tpu.memory_space<vmem>>, %arg5: memref<1x16xf32, #tpu.memory_space<vmem>>, %arg6: memref<16x128xf32, #tpu.memory_space<vmem>>, %arg7: memref<1x128xf32, #tpu.memory_space<vmem>>, %arg8: memref<8x128xf32, #tpu.memory_space<vmem>>) attributes {dimension_semantics = [#tpu.dimension_semantics<parallel>], iteration_bounds = array<i64: 1>, scalar_prefetch = 0 : i64, scratch_operands = 0 : i64, tpu.core_type = #tpu.core_type<tc>, window_params = [{transform_indices = @transform_0, window_bounds = array<i64: 8, 16>}, {pipeline_mode = #tpu.pipeline_mode<synchronous>, transform_indices = @transform_1, window_bounds = array<i64: 16, 32>}, {pipeline_mode = #tpu.pipeline_mode<synchronous>, transform_indices = @transform_2, window_bounds = array<i64: 1, 32>}, {pipeline_mode = #tpu.pipeline_mode<synchronous>, transform_indices = @transform_3, window_bounds = array<i64: 32, 16>}, {pipeline_mode = #tpu.pipeline_mode<synchronous>, transform_indices = @transform_4, window_bounds = array<i64: 1, 16>}, {pipeline_mode = #tpu.pipeline_mode<synchronous>, transform_indices = @transform_5, window_bounds = array<i64: 16, 128>}, {pipeline_mode = #tpu.pipeline_mode<synchronous>, transform_indices = @transform_6, window_bounds = array<i64: 1, 128>}, {transform_indices = @transform_7, window_bounds = array<i64: 8, 128>}]} {
    %c0 = arith.constant 0 : index
    %c0_0 = arith.constant 0 : index
    %0 = vector.load %arg1[%c0, %c0_0] : memref<8x16xf32, #tpu.memory_space<vmem>>, vector<8x16xf32>
    %c0_1 = arith.constant 0 : index
    %c0_2 = arith.constant 0 : index
    %1 = vector.load %arg2[%c0_1, %c0_2] : memref<16x32xf32, #tpu.memory_space<vmem>>, vector<16x32xf32>
    %cst = arith.constant dense<0.000000e+00> : vector<8x32xf32>
    %2 = tpu.matmul %0, %1, %cst {dimension_numbers = #tpu.dot_dimension_numbers<[1], [0], [0], [1], [0, 0, 1, 1], [], []>} : vector<8x16xf32>, vector<16x32xf32>, vector<8x32xf32> -> vector<8x32xf32>
    %c0_3 = arith.constant 0 : index
    %c0_4 = arith.constant 0 : index
    %3 = vector.load %arg3[%c0_3, %c0_4] : memref<1x32xf32, #tpu.memory_space<vmem>>, vector<1x32xf32>
    %4 = vector.broadcast %3 : vector<1x32xf32> to vector<8x32xf32>
    %5 = arith.addf %2, %4 : vector<8x32xf32>
    %cst_5 = arith.constant 0.000000e+00 : f32
    %6 = vector.broadcast %cst_5 : f32 to vector<8x32xf32>
    %7 = arith.cmpf ogt, %5, %6 : vector<8x32xf32>
    %cst_6 = arith.constant 0.00999999977 : f32
    %8 = vector.broadcast %cst_6 : f32 to vector<8x32xf32>
    %9 = arith.mulf %8, %5 : vector<8x32xf32>
    %10 = arith.select %7, %5, %9 : vector<8x32xi1>, vector<8x32xf32>
    %c0_7 = arith.constant 0 : index
    %c0_8 = arith.constant 0 : index
    %11 = vector.load %arg4[%c0_7, %c0_8] : memref<32x16xf32, #tpu.memory_space<vmem>>, vector<32x16xf32>
    %cst_9 = arith.constant dense<0.000000e+00> : vector<8x16xf32>
    %12 = tpu.matmul %10, %11, %cst_9 {dimension_numbers = #tpu.dot_dimension_numbers<[1], [0], [0], [1], [0, 0, 1, 1], [], []>} : vector<8x32xf32>, vector<32x16xf32>, vector<8x16xf32> -> vector<8x16xf32>
    %c0_10 = arith.constant 0 : index
    %c0_11 = arith.constant 0 : index
    %13 = vector.load %arg5[%c0_10, %c0_11] : memref<1x16xf32, #tpu.memory_space<vmem>>, vector<1x16xf32>
    %14 = vector.broadcast %13 : vector<1x16xf32> to vector<8x16xf32>
    %15 = arith.addf %12, %14 : vector<8x16xf32>
    %cst_12 = arith.constant 0.000000e+00 : f32
    %16 = vector.broadcast %cst_12 : f32 to vector<8x16xf32>
    %17 = arith.cmpf ogt, %15, %16 : vector<8x16xf32>
    %cst_13 = arith.constant 0.00999999977 : f32
    %18 = vector.broadcast %cst_13 : f32 to vector<8x16xf32>
    %19 = arith.mulf %18, %15 : vector<8x16xf32>
    %20 = arith.select %17, %15, %19 : vector<8x16xi1>, vector<8x16xf32>
    %c0_14 = arith.constant 0 : index
    %c0_15 = arith.constant 0 : index
    %21 = vector.load %arg6[%c0_14, %c0_15] : memref<16x128xf32, #tpu.memory_space<vmem>>, vector<16x128xf32>
    %cst_16 = arith.constant dense<0.000000e+00> : vector<8x128xf32>
    %22 = tpu.matmul %20, %21, %cst_16 {dimension_numbers = #tpu.dot_dimension_numbers<[1], [0], [0], [1], [0, 0, 1, 1], [], []>} : vector<8x16xf32>, vector<16x128xf32>, vector<8x128xf32> -> vector<8x128xf32>
    %c0_17 = arith.constant 0 : index
    %c0_18 = arith.constant 0 : index
    %23 = vector.load %arg7[%c0_17, %c0_18] : memref<1x128xf32, #tpu.memory_space<vmem>>, vector<1x128xf32>
    %24 = vector.broadcast %23 : vector<1x128xf32> to vector<8x128xf32>
    %25 = arith.addf %22, %24 : vector<8x128xf32>
    %cst_19 = arith.constant 0.000000e+00 : f32
    %26 = vector.broadcast %cst_19 : f32 to vector<8x128xf32>
    %27 = arith.cmpf ogt, %25, %26 : vector<8x128xf32>
    %cst_20 = arith.constant 0.00999999977 : f32
    %28 = vector.broadcast %cst_20 : f32 to vector<8x128xf32>
    %29 = arith.mulf %28, %25 : vector<8x128xf32>
    %30 = arith.select %27, %25, %29 : vector<8x128xi1>, vector<8x128xf32>
    %c0_21 = arith.constant 0 : index
    %c0_22 = arith.constant 0 : index
    %31 = vector.load %arg8[%c0_21, %c0_22] : memref<8x128xf32, #tpu.memory_space<vmem>>, vector<8x128xf32>
    tpu.vector_store %arg8[%c0_21, %c0_22], %30 {strides = array<i32>} : memref<8x128xf32, #tpu.memory_space<vmem>>, vector<8x128xf32>,
    return
  }
  func.func @transform_0(%arg0: i32) -> (i32, i32) {
    %c0_i32 = arith.constant 0 : i32
    %c0_i32_0 = arith.constant 0 : i32
    return %arg0, %c0_i32 : i32, i32
  }
  func.func @transform_1(%arg0: i32) -> (i32, i32) {
    %c0_i32 = arith.constant 0 : i32
    %c0_i32_0 = arith.constant 0 : i32
    %c0_i32_1 = arith.constant 0 : i32
    return %c0_i32, %c0_i32_0 : i32, i32
  }
  func.func @transform_2(%arg0: i32) -> (i32, i32) {
    %c0_i32 = arith.constant 0 : i32
    %c0_i32_0 = arith.constant 0 : i32
    %c0_i32_1 = arith.constant 0 : i32
    return %c0_i32, %c0_i32_0 : i32, i32
  }
  func.func @transform_3(%arg0: i32) -> (i32, i32) {
    %c0_i32 = arith.constant 0 : i32
    %c0_i32_0 = arith.constant 0 : i32
    %c0_i32_1 = arith.constant 0 : i32
    return %c0_i32, %c0_i32_0 : i32, i32
  }
  func.func @transform_4(%arg0: i32) -> (i32, i32) {
    %c0_i32 = arith.constant 0 : i32
    %c0_i32_0 = arith.constant 0 : i32
    %c0_i32_1 = arith.constant 0 : i32
    return %c0_i32, %c0_i32_0 : i32, i32
  }
  func.func @transform_5(%arg0: i32) -> (i32, i32) {
    %c0_i32 = arith.constant 0 : i32
    %c0_i32_0 = arith.constant 0 : i32
    %c0_i32_1 = arith.constant 0 : i32
    return %c0_i32, %c0_i32_0 : i32, i32
  }
  func.func @transform_6(%arg0: i32) -> (i32, i32) {
    %c0_i32 = arith.constant 0 : i32
    %c0_i32_0 = arith.constant 0 : i32
    %c0_i32_1 = arith.constant 0 : i32
    return %c0_i32, %c0_i32_0 : i32, i32
  }
  func.func @transform_7(%arg0: i32) -> (i32, i32) {
    %c0_i32 = arith.constant 0 : i32
    %c0_i32_0 = arith.constant 0 : i32
    return %arg0, %c0_i32 : i32, i32
  }
}

module attributes {stable_mosaic.version = 11 : i64} {
  func.func @fc_model_kernel(%arg0: i32, %arg1: memref<8x16xf32, #tpu.memory_space<vmem>>, %arg2: memref<16x32xf32, #tpu.memory_space<vmem>>, %arg3: memref<1x32xf32, #tpu.memory_space<vmem>>, %arg4: memref<32x16xf32, #tpu.memory_space<vmem>>, %arg5: memref<1x16xf32, #tpu.memory_space<vmem>>, %arg6: memref<16x128xf32, #tpu.memory_space<vmem>>, %arg7: memref<1x128xf32, #tpu.memory_space<vmem>>, %arg8: memref<8x128xf32, #tpu.memory_space<vmem>>) attributes {dimension_semantics = [#tpu.dimension_semantics<parallel>], iteration_bounds = array<i64: 1>, scalar_prefetch = 0 : i64, scratch_operands = 0 : i64, tpu.core_type = #tpu.core_type<tc>, window_params = [{transform_indices = @transform_0, window_bounds = array<i64: 8, 16>}, {pipeline_mode = #tpu.pipeline_mode<synchronous>, transform_indices = @transform_1, window_bounds = array<i64: 16, 32>}, {pipeline_mode = #tpu.pipeline_mode<synchronous>, transform_indices = @transform_2, window_bounds = array<i64: 1, 32>}, {pipeline_mode = #tpu.pipeline_mode<synchronous>, transform_indices = @transform_3, window_bounds = array<i64: 32, 16>}, {pipeline_mode = #tpu.pipeline_mode<synchronous>, transform_indices = @transform_4, window_bounds = array<i64: 1, 16>}, {pipeline_mode = #tpu.pipeline_mode<synchronous>, transform_indices = @transform_5, window_bounds = array<i64: 16, 128>}, {pipeline_mode = #tpu.pipeline_mode<synchronous>, transform_indices = @transform_6, window_bounds = array<i64: 1, 128>}, {transform_indices = @transform_7, window_bounds = array<i64: 8, 128>}]} {
    %c0 = arith.constant 0 : index
    %c0_0 = arith.constant 0 : index
    %0 = vector.load %arg1[%c0, %c0_0] : memref<8x16xf32, #tpu.memory_space<vmem>>, vector<8x16xf32>
    %c0_1 = arith.constant 0 : index
    %c0_2 = arith.constant 0 : index
    %1 = vector.load %arg2[%c0_1, %c0_2] : memref<16x32xf32, #tpu.memory_space<vmem>>, vector<16x32xf32>
    %cst = arith.constant dense<0.000000e+00> : vector<8x32xf32>
    %2 = tpu.matmul %0, %1, %cst {dimension_numbers = #tpu.dot_dimension_numbers<[1], [0], [0], [1], [0, 0, 1, 1], [], []>} : vector<8x16xf32>, vector<16x32xf32>, vector<8x32xf32> -> vector<8x32xf32>
    %c0_3 = arith.constant 0 : index
    %c0_4 = arith.constant 0 : index
    %3 = vector.load %arg3[%c0_3, %c0_4] : memref<1x32xf32, #tpu.memory_space<vmem>>, vector<1x32xf32>
    %4 = vector.broadcast %3 : vector<1x32xf32> to vector<8x32xf32>
    %5 = arith.addf %2, %4 : vector<8x32xf32>
    %cst_5 = arith.constant 0.000000e+00 : f32
    %6 = vector.broadcast %cst_5 : f32 to vector<8x32xf32>
    %7 = arith.cmpf ogt, %5, %6 : vector<8x32xf32>
    %cst_6 = arith.constant 0.00999999977 : f32
    %8 = vector.broadcast %cst_6 : f32 to vector<8x32xf32>
    %9 = arith.mulf %8, %5 : vector<8x32xf32>
    %10 = arith.select %7, %5, %9 : vector<8x32xi1>, vector<8x32xf32>
    %c0_7 = arith.constant 0 : index
    %c0_8 = arith.constant 0 : index
    %11 = vector.load %arg4[%c0_7, %c0_8] : memref<32x16xf32, #tpu.memory_space<vmem>>, vector<32x16xf32>
    %cst_9 = arith.constant dense<0.000000e+00> : vector<8x16xf32>
    %12 = tpu.matmul %10, %11, %cst_9 {dimension_numbers = #tpu.dot_dimension_numbers<[1], [0], [0], [1], [0, 0, 1, 1], [], []>} : vector<8x32xf32>, vector<32x16xf32>, vector<8x16xf32> -> vector<8x16xf32>
    %c0_10 = arith.constant 0 : index
    %c0_11 = arith.constant 0 : index
    %13 = vector.load %arg5[%c0_10, %c0_11] : memref<1x16xf32, #tpu.memory_space<vmem>>, vector<1x16xf32>
    %14 = vector.broadcast %13 : vector<1x16xf32> to vector<8x16xf32>
    %15 = arith.addf %12, %14 : vector<8x16xf32>
    %cst_12 = arith.constant 0.000000e+00 : f32
    %16 = vector.broadcast %cst_12 : f32 to vector<8x16xf32>
    %17 = arith.cmpf ogt, %15, %16 : vector<8x16xf32>
    %cst_13 = arith.constant 0.00999999977 : f32
    %18 = vector.broadcast %cst_13 : f32 to vector<8x16xf32>
    %19 = arith.mulf %18, %15 : vector<8x16xf32>
    %20 = arith.select %17, %15, %19 : vector<8x16xi1>, vector<8x16xf32>
    %c0_14 = arith.constant 0 : index
    %c0_15 = arith.constant 0 : index
    %21 = vector.load %arg6[%c0_14, %c0_15] : memref<16x128xf32, #tpu.memory_space<vmem>>, vector<16x128xf32>
    %cst_16 = arith.constant dense<0.000000e+00> : vector<8x128xf32>
    %22 = tpu.matmul %20, %21, %cst_16 {dimension_numbers = #tpu.dot_dimension_numbers<[1], [0], [0], [1], [0, 0, 1, 1], [], []>} : vector<8x16xf32>, vector<16x128xf32>, vector<8x128xf32> -> vector<8x128xf32>
    %c0_17 = arith.constant 0 : index
    %c0_18 = arith.constant 0 : index
    %23 = vector.load %arg7[%c0_17, %c0_18] : memref<1x128xf32, #tpu.memory_space<vmem>>, vector<1x128xf32>
    %24 = vector.broadcast %23 : vector<1x128xf32> to vector<8x128xf32>
    %25 = arith.addf %22, %24 : vector<8x128xf32>
    %cst_19 = arith.constant 0.000000e+00 : f32
    %26 = vector.broadcast %cst_19 : f32 to vector<8x128xf32>
    %27 = arith.cmpf ogt, %25, %26 : vector<8x128xf32>
    %cst_20 = arith.constant 0.00999999977 : f32
    %28 = vector.broadcast %cst_20 : f32 to vector<8x128xf32>
    %29 = arith.mulf %28, %25 : vector<8x128xf32>
    %30 = arith.select %27, %25, %29 : vector<8x128xi1>, vector<8x128xf32>
    %c0_21 = arith.constant 0 : index
    %c0_22 = arith.constant 0 : index
    %31 = vector.load %arg8[%c0_21, %c0_22] : memref<8x128xf32, #tpu.memory_space<vmem>>, vector<8x128xf32>
    tpu.vector_store %arg8[%c0_21, %c0_22], %30 {strides = array<i32>} : memref<8x128xf32, #tpu.memory_space<vmem>>, vector<8x128xf32>,
    return
  }
  func.func @transform_0(%arg0: i32) -> (i32, i32) {
    %c0_i32 = arith.constant 0 : i32
    %c0_i32_0 = arith.constant 0 : i32
    return %arg0, %c0_i32 : i32, i32
  }
  func.func @transform_1(%arg0: i32) -> (i32, i32) {
    %c0_i32 = arith.constant 0 : i32
    %c0_i32_0 = arith.constant 0 : i32
    %c0_i32_1 = arith.constant 0 : i32
    return %c0_i32, %c0_i32_0 : i32, i32
  }
  func.func @transform_2(%arg0: i32) -> (i32, i32) {
    %c0_i32 = arith.constant 0 : i32
    %c0_i32_0 = arith.constant 0 : i32
    %c0_i32_1 = arith.constant 0 : i32
    return %c0_i32, %c0_i32_0 : i32, i32
  }
  func.func @transform_3(%arg0: i32) -> (i32, i32) {
    %c0_i32 = arith.constant 0 : i32
    %c0_i32_0 = arith.constant 0 : i32
    %c0_i32_1 = arith.constant 0 : i32
    return %c0_i32, %c0_i32_0 : i32, i32
  }
  func.func @transform_4(%arg0: i32) -> (i32, i32) {
    %c0_i32 = arith.constant 0 : i32
    %c0_i32_0 = arith.constant 0 : i32
    %c0_i32_1 = arith.constant 0 : i32
    return %c0_i32, %c0_i32_0 : i32, i32
  }
  func.func @transform_5(%arg0: i32) -> (i32, i32) {
    %c0_i32 = arith.constant 0 : i32
    %c0_i32_0 = arith.constant 0 : i32
    %c0_i32_1 = arith.constant 0 : i32
    return %c0_i32, %c0_i32_0 : i32, i32
  }
  func.func @transform_6(%arg0: i32) -> (i32, i32) {
    %c0_i32 = arith.constant 0 : i32
    %c0_i32_0 = arith.constant 0 : i32
    %c0_i32_1 = arith.constant 0 : i32
    return %c0_i32, %c0_i32_0 : i32, i32
  }
  func.func @transform_7(%arg0: i32) -> (i32, i32) {
    %c0_i32 = arith.constant 0 : i32
    %c0_i32_0 = arith.constant 0 : i32
    return %arg0, %c0_i32 : i32, i32
  }
}

</mosaic_0001>

<bundles_post_ra>
// kernel: _fc_forward.1
= control target key start
LH: loop header
LB: loop body
LE: loop exit
PB: predicated region body
PF: predicated region fallthrough
CT: control target
= control target key end

     0   :  { %v384_v2 = vmov 0.0|0.0   ;;  %vm385_vm0 = vmmov 0   ;;  %v386_v4 = vmov 0.0   ;;  %s481_s0 = inlined_call_operand.vmem [shape: f32[8,16], index: 0, kind: input, shape index: {}]   ;;  %s482_s1 = inlined_call_operand.vmem [shape: f32[16,32], index: 1, kind: input, shape index: {}]   ;;  %s483_s2 = inlined_call_operand.vmem [shape: f32[1,32], index: 2, kind: input, shape index: {}]   ;;  %s484_s3 = inlined_call_operand.vmem [shape: f32[32,16], index: 3, kind: input, shape index: {}]   ;;  %s485_s4 = inlined_call_operand.vmem [shape: f32[1,16], index: 4, kind: input, shape index: {}]   ;;  %s486_s5 = inlined_call_operand.vmem [shape: f32[16,128], index: 5, kind: input, shape index: {}]   ;;  %s487_s6 = inlined_call_operand.vmem [shape: f32[1,128], index: 6, kind: input, shape index: {}]   ;;  %s488_s7 = inlined_call_operand.hbm [shape: f32[8,128], index: 7, kind: output, shape index: {}]  }
   0x1   :  { %v28_v0 = vld [vmem:[%s482_s1] sm:$0xff]  ;;  %v29_v1 = vld [vmem:[%s482_s1 + $0x8] sm:$0xff]  ;;  %344 = vmatprep.subr.bf16.mxu0 %v384_v2  ;;  %323 = vmatprep.mubr.msk.f32.mxu0 %vm385_vm0, %v386_v4 }
   0x2   :  { %v345_v3 = vpack.c.bf16 %v29_v1, %v28_v0  ;;  %v114_v5 = vld [vmem:[%s484_s3] sm:$0xff]  ;;  %v115_v6 = vld [vmem:[%s484_s3 + $0x8] sm:$0xff]  ;;  %347 = vmatprep.subr.bf16.mxu1 %v384_v2  ;;  %334 = vmatprep.mubr.msk.f32.mxu1 %vm385_vm0, %v386_v4 }
   0x3   :  { %v348_v7 = vpack.c.bf16 %v115_v6, %v114_v5 }
   0x4   :  { %12 = vsyncpa [#allocation3], 0  ;;  %346 = vmatpush3.bf16.msra.mxu0 %v345_v3  ;;  %v27_v8 = vld [vmem:[%s481_s0] sm:$0xff]  ;;  %vm37_vm1 = vcmask 130048   ;;  %v116_v9 = vld [vmem:[%s484_s3 + $0x10] sm:$0xff]  ;;  %vm125_vm3 = vcmask 261120  }
   0x5   :  { %349 = vmatpush3.bf16.msra.mxu1 %v348_v7  ;;  %353 = vmatprep.subr.bf16.mxu0 %v384_v2  ;;  %v117_v10 = vld [vmem:[%s484_s3 + $0x18] sm:$0xff]  ;;  %v302_v12 = vld [vmem:[%s483_s2] ss:$0 sm:$0xff]  ;;  %v203_v19 = vld [vmem:[%s486_s5 + $0x8] sm:$0xff] }
   0x6   :  { %350 = vmatprep.subr.bf16.mxu1 %v384_v2  ;;  %v351_v11 = vpack.c.bf16 %v117_v10, %v116_v9  ;;  %v202_v18 = vld [vmem:[%s486_s5] sm:$0xff]  ;;  %s387_s5 = smov [#allocation2]  }
   0x7   :  { %324 = vmatmul.mubr.msk.f32.vlgmr.msra.gmra.mrb[0].mxu0 %vm37_vm1, %v27_v8  ;;  %v354_v20 = vpack.c.bf16 %v203_v19, %v202_v18  ;;  %v304_v21 = vld [vmem:[%s485_s4] ss:$0 sm:$0xff]  ;;  %s294_s21 = sshll.u32 %s387_s5, 4  ;;  %s295_s21 = int_to_ptr.vmem [resolvable:$true] %s294_s21 }
   0x8   :  { %341 = vmatprep.mubr.msk.f32.mxu0 %vm385_vm0, %v386_v4  ;;  %v306_v27 = vld [vmem:[%s487_s6] ss:$0 sm:$0xff]  ;;  %s360_s4 = scalar_lea.vmem %s295_s21, 128  ;;  %p365_p1 = scmp.lt.s32.totalorder %s295_s21, %s295_s21 }
   0x9   :  { %352 = vmatpush3.bf16.msra.mxu1 %v351_v11  ;;  %355 = vmatpush3.bf16.msra.mxu0 %v354_v20  ;;  %p361_p0 = scmp.ne.s32.totalorder %s295_s21, %s360_s4  ;;  %p366_p2 = scmp.lt.s32.totalorder %s360_s4, %s360_s4 }
   0xb   :  { %p367_p3 = por %p366_p2, %p365_p1 }
   0xd   :  { %p368_p4 = pnand %p367_p3, %p361_p0 }
  0xda   :  { %v107_v13 = vpop.f32.mrb[0].mxu0 }
  0xdb   :  { %v108_v14 = vadd.f32 %v302_v12, %v107_v13  ;;  %v325_v15 = vpop.f32.mrb[1].mxu0 }
  0xdd   :  { %vm111_vm2 = vcmp.gt.f32.partialorder %v108_v14, 0.0  ;;  %v112_v16 = vmul.f32 0.01, %v108_v14 }
  0xdf   :  { %v113_v17 = vsel %vm111_vm2, %v108_v14, %v112_v16 }
  0xe0   :  { %335 = vmatmul.mubr.msk.f32.vlgmr.msra.gmra.mrb[0].mxu1 %vm125_vm3, %v113_v17 }
 0x1b3   :  { %v195_v22 = vpop.f32.mrb[0].mxu1 }
 0x1b4   :  { %v196_v23 = vadd.f32 %v304_v21, %v195_v22  ;;  %v336_v24 = vpop.f32.mrb[1].mxu1 }
 0x1b6   :  { %vm199_vm4 = vcmp.gt.f32.partialorder %v196_v23, 0.0  ;;  %v200_v25 = vmul.f32 0.01, %v196_v23 }
 0x1b8   :  { %v201_v26 = vsel %vm199_vm4, %v196_v23, %v200_v25 }
 0x1b9   :  { %342 = vmatmul.mubr.msk.f32.vlgmr.msra.gmra.mrb[2].mxu0 %vm37_vm1, %v201_v26 }
 0x28c   :  { %v280_v28 = vpop.f32.mrb[2].mxu0 }
 0x28d   :  { %v281_v29 = vadd.f32 %v306_v27, %v280_v28  ;;  %v343_v30 = vpop.f32.mrb[3].mxu0 }
 0x28f   :  { %v285_v31 = vmul.f32 0.01, %v281_v29  ;;  %vm284_vm5 = vcmp.gt.f32.partialorder %v281_v29, 0.0 }
 0x291   :  { %v286_v32 = vsel %vm284_vm5, %v281_v29, %v285_v31 }
 0x292   :  { %287 = vst [vmem:[#allocation2] sm:$0xff] %v286_v32 }
 0x293   :  { %371 = shalt.err (!%p368_p4)
}
 0x294   :  { %s372_s6 = scalar_lea.hbm %s488_s7, 128 }
 0x295   :  { %p373_p5 = scmp.ne.s32.totalorder %s488_s7, %s372_s6  ;;  %p376_p6 = scmp.lt.u32.totalorder %s372_s6, %s488_s7 }
 0x297   :  { %p378_p7 = pnand %p376_p6, %p373_p5 }
 0x299   :  { %381 = shalt.err (!%p378_p7)
}
 0x29a   :  { %297 = dma.vmem_to_hbm [thread:$0]  %s295_s21, 128, %s488_s7, [#allocation3]  }
 0x29b   :  { %382 = dma.done.wait [#allocation3], 128  }
 0x29c   :  { %383 = vsyncadd [#allocation3], 4294967168 }
 0x29d   :  { %301 = vsyncpa [#allocation3], 1 }

// kernel: _fc_forward.1
= control target key start
LH: loop header
LB: loop body
LE: loop exit
PB: predicated region body
PF: predicated region fallthrough
CT: control target
= control target key end

     0   :  { %v384_v2 = vmov 0.0|0.0   ;;  %vm385_vm0 = vmmov 0   ;;  %v386_v4 = vmov 0.0   ;;  %s481_s0 = inlined_call_operand.vmem [shape: f32[8,16], index: 0, kind: input, shape index: {}]   ;;  %s482_s1 = inlined_call_operand.vmem [shape: f32[16,32], index: 1, kind: input, shape index: {}]   ;;  %s483_s2 = inlined_call_operand.vmem [shape: f32[1,32], index: 2, kind: input, shape index: {}]   ;;  %s484_s3 = inlined_call_operand.vmem [shape: f32[32,16], index: 3, kind: input, shape index: {}]   ;;  %s485_s4 = inlined_call_operand.vmem [shape: f32[1,16], index: 4, kind: input, shape index: {}]   ;;  %s486_s5 = inlined_call_operand.vmem [shape: f32[16,128], index: 5, kind: input, shape index: {}]   ;;  %s487_s6 = inlined_call_operand.vmem [shape: f32[1,128], index: 6, kind: input, shape index: {}]   ;;  %s488_s7 = inlined_call_operand.hbm [shape: f32[8,128], index: 7, kind: output, shape index: {}]  }
   0x1   :  { %v28_v0 = vld [vmem:[%s482_s1] sm:$0xff]  ;;  %v29_v1 = vld [vmem:[%s482_s1 + $0x8] sm:$0xff]  ;;  %344 = vmatprep.subr.bf16.mxu0 %v384_v2  ;;  %323 = vmatprep.mubr.msk.f32.mxu0 %vm385_vm0, %v386_v4 }
   0x2   :  { %v345_v3 = vpack.c.bf16 %v29_v1, %v28_v0  ;;  %v114_v5 = vld [vmem:[%s484_s3] sm:$0xff]  ;;  %v115_v6 = vld [vmem:[%s484_s3 + $0x8] sm:$0xff]  ;;  %347 = vmatprep.subr.bf16.mxu1 %v384_v2  ;;  %334 = vmatprep.mubr.msk.f32.mxu1 %vm385_vm0, %v386_v4 }
   0x3   :  { %v348_v7 = vpack.c.bf16 %v115_v6, %v114_v5 }
   0x4   :  { %12 = vsyncpa [#allocation3], 0  ;;  %346 = vmatpush3.bf16.msra.mxu0 %v345_v3  ;;  %v27_v8 = vld [vmem:[%s481_s0] sm:$0xff]  ;;  %vm37_vm1 = vcmask 130048   ;;  %v116_v9 = vld [vmem:[%s484_s3 + $0x10] sm:$0xff]  ;;  %vm125_vm3 = vcmask 261120  }
   0x5   :  { %349 = vmatpush3.bf16.msra.mxu1 %v348_v7  ;;  %353 = vmatprep.subr.bf16.mxu0 %v384_v2  ;;  %v117_v10 = vld [vmem:[%s484_s3 + $0x18] sm:$0xff]  ;;  %v302_v12 = vld [vmem:[%s483_s2] ss:$0 sm:$0xff]  ;;  %v203_v19 = vld [vmem:[%s486_s5 + $0x8] sm:$0xff] }
   0x6   :  { %350 = vmatprep.subr.bf16.mxu1 %v384_v2  ;;  %v351_v11 = vpack.c.bf16 %v117_v10, %v116_v9  ;;  %v202_v18 = vld [vmem:[%s486_s5] sm:$0xff]  ;;  %s387_s5 = smov [#allocation2]  }
   0x7   :  { %324 = vmatmul.mubr.msk.f32.vlgmr.msra.gmra.mrb[0].mxu0 %vm37_vm1, %v27_v8  ;;  %v354_v20 = vpack.c.bf16 %v203_v19, %v202_v18  ;;  %v304_v21 = vld [vmem:[%s485_s4] ss:$0 sm:$0xff]  ;;  %s294_s21 = sshll.u32 %s387_s5, 4  ;;  %s295_s21 = int_to_ptr.vmem [resolvable:$true] %s294_s21 }
   0x8   :  { %341 = vmatprep.mubr.msk.f32.mxu0 %vm385_vm0, %v386_v4  ;;  %v306_v27 = vld [vmem:[%s487_s6] ss:$0 sm:$0xff]  ;;  %s360_s4 = scalar_lea.vmem %s295_s21, 128  ;;  %p365_p1 = scmp.lt.s32.totalorder %s295_s21, %s295_s21 }
   0x9   :  { %352 = vmatpush3.bf16.msra.mxu1 %v351_v11  ;;  %355 = vmatpush3.bf16.msra.mxu0 %v354_v20  ;;  %p361_p0 = scmp.ne.s32.totalorder %s295_s21, %s360_s4  ;;  %p366_p2 = scmp.lt.s32.totalorder %s360_s4, %s360_s4 }
   0xb   :  { %p367_p3 = por %p366_p2, %p365_p1 }
   0xd   :  { %p368_p4 = pnand %p367_p3, %p361_p0 }
  0xda   :  { %v107_v13 = vpop.f32.mrb[0].mxu0 }
  0xdb   :  { %v108_v14 = vadd.f32 %v302_v12, %v107_v13  ;;  %v325_v15 = vpop.f32.mrb[1].mxu0 }
  0xdd   :  { %vm111_vm2 = vcmp.gt.f32.partialorder %v108_v14, 0.0  ;;  %v112_v16 = vmul.f32 0.01, %v108_v14 }
  0xdf   :  { %v113_v17 = vsel %vm111_vm2, %v108_v14, %v112_v16 }
  0xe0   :  { %335 = vmatmul.mubr.msk.f32.vlgmr.msra.gmra.mrb[0].mxu1 %vm125_vm3, %v113_v17 }
 0x1b3   :  { %v195_v22 = vpop.f32.mrb[0].mxu1 }
 0x1b4   :  { %v196_v23 = vadd.f32 %v304_v21, %v195_v22  ;;  %v336_v24 = vpop.f32.mrb[1].mxu1 }
 0x1b6   :  { %vm199_vm4 = vcmp.gt.f32.partialorder %v196_v23, 0.0  ;;  %v200_v25 = vmul.f32 0.01, %v196_v23 }
 0x1b8   :  { %v201_v26 = vsel %vm199_vm4, %v196_v23, %v200_v25 }
 0x1b9   :  { %342 = vmatmul.mubr.msk.f32.vlgmr.msra.gmra.mrb[2].mxu0 %vm37_vm1, %v201_v26 }
 0x28c   :  { %v280_v28 = vpop.f32.mrb[2].mxu0 }
 0x28d   :  { %v281_v29 = vadd.f32 %v306_v27, %v280_v28  ;;  %v343_v30 = vpop.f32.mrb[3].mxu0 }
 0x28f   :  { %v285_v31 = vmul.f32 0.01, %v281_v29  ;;  %vm284_vm5 = vcmp.gt.f32.partialorder %v281_v29, 0.0 }
 0x291   :  { %v286_v32 = vsel %vm284_vm5, %v281_v29, %v285_v31 }
 0x292   :  { %287 = vst [vmem:[#allocation2] sm:$0xff] %v286_v32 }
 0x293   :  { %371 = shalt.err (!%p368_p4)
}
 0x294   :  { %s372_s6 = scalar_lea.hbm %s488_s7, 128 }
 0x295   :  { %p373_p5 = scmp.ne.s32.totalorder %s488_s7, %s372_s6  ;;  %p376_p6 = scmp.lt.u32.totalorder %s372_s6, %s488_s7 }
 0x297   :  { %p378_p7 = pnand %p376_p6, %p373_p5 }
 0x299   :  { %381 = shalt.err (!%p378_p7)
}
 0x29a   :  { %297 = dma.vmem_to_hbm [thread:$0]  %s295_s21, 128, %s488_s7, [#allocation3]  }
 0x29b   :  { %382 = dma.done.wait [#allocation3], 128  }
 0x29c   :  { %383 = vsyncadd [#allocation3], 4294967168 }
 0x29d   :  { %301 = vsyncpa [#allocation3], 1 }

</bundles_post_ra>
